<compile_context>
chip_gen: v7x
topology: tpu7x:2x2x1
jax: 0.10.0
libtpu: 0.0.40
codegen_flags: <defaults>
</compile_context>

<pallas_src>
import functools

import jax
import jax.numpy as jnp
from jax.experimental import pallas as pl
from jax.experimental.pallas import tpu as pltpu


def _gabor_kernel(x_ref, w_ref, b_ref, o_ref, *, omega, sigma_sq, dout):
    # Lane-dense layout: batch (tm) on the lane axis.
    #   x_ref: (2*Din, tm)   w_ref: (4*Dout, 2*Din)   b_ref: (4*Dout, 1)
    #   z    : (4*Dout, tm) = [lin_r ; lin_i ; sy_r ; sy_i]  stacked on sublanes
    z = jnp.dot(w_ref[...], x_ref[...], preferred_element_type=jnp.float32)
    z = z + b_ref[...]                                   # lane-broadcast bias

    # Full-width square, then cheap sublane-slab adds: arg = |lin|^2 + |sy|^2
    zsq = z * z
    arg = (zsq[0 * dout:1 * dout, :] + zsq[1 * dout:2 * dout, :]
           + zsq[2 * dout:3 * dout, :] + zsq[3 * dout:4 * dout, :])

    lin_r = z[0 * dout:1 * dout, :]
    lin_i = z[1 * dout:2 * dout, :]

    # exp(1j*omega*lin) * exp(-sigma^2*arg)
    #   = exp(-sigma^2*arg - omega*lin_i) * (cos(omega*lin_r) + 1j*sin(omega*lin_r))
    mag = jnp.exp(-sigma_sq * arg - omega * lin_i)       # single fused exp
    phase = omega * lin_r

    # Write the two halves directly (no concat temp); o_ref is (2*Dout, tm).
    o_ref[:dout, :] = mag * jnp.cos(phase)
    o_ref[dout:, :] = mag * jnp.sin(phase)


def _cdiv(a, b):
    return -(-a // b)


def _pick_tile(n, tm_max=4096):
    """Lane-axis tile: multiple of 128, <= tm_max, aiming for >= 4 grid steps."""
    n128 = _cdiv(n, 128) * 128
    tm = min(tm_max, n128)
    while tm > 128 and _cdiv(n128, tm) < 4:
        tm //= 2
    tm = max(128, (tm // 128) * 128)
    return tm


def complex_gabor_layer_2d(x, w_lin, b_lin, w_so, b_so, omega0, sigma0, *,
                           tm_max=4096):
    """x: (N, Din) complex64.  w_*: (Dout, Din) complex64.  b_*: (Dout,) complex64."""
    N, Din = x.shape
    Dout = w_lin.shape[0]

    tm = _pick_tile(N, tm_max)
    n_pad = _cdiv(N, tm) * tm

    # x transposed + real/imag stacked on the sublane axis: (2*Din, N) -> pad lanes.
    x_bigT = jnp.concatenate(
        [jnp.real(x).T.astype(jnp.float32), jnp.imag(x).T.astype(jnp.float32)],
        axis=0)                                                   # (2*Din, N)
    if n_pad != N:
        x_bigT = jnp.pad(x_bigT, ((0, 0), (0, n_pad - N)))

    # Signed block weight realizing both complex matmuls at once, already laid out
    # for the transposed compute: rows are output components, cols are [re | im] of x.
    wr_l = jnp.real(w_lin).astype(jnp.float32)   # (Dout, Din)
    wi_l = jnp.imag(w_lin).astype(jnp.float32)
    wr_s = jnp.real(w_so).astype(jnp.float32)
    wi_s = jnp.imag(w_so).astype(jnp.float32)
    w_bigT = jnp.concatenate([
        jnp.concatenate([wr_l, -wi_l], axis=1),   # -> lin_r rows
        jnp.concatenate([wi_l, wr_l], axis=1),    # -> lin_i rows
        jnp.concatenate([wr_s, -wi_s], axis=1),   # -> sy_r  rows
        jnp.concatenate([wi_s, wr_s], axis=1),    # -> sy_i  rows
    ], axis=0)                                                    # (4*Dout, 2*Din)

    b_col = jnp.concatenate([jnp.real(b_lin), jnp.imag(b_lin),
                             jnp.real(b_so), jnp.imag(b_so)]
                            ).astype(jnp.float32).reshape(4 * Dout, 1)

    kernel = functools.partial(_gabor_kernel,
                               omega=float(omega0),
                               sigma_sq=float(sigma0) * float(sigma0),
                               dout=Dout)

    out_t = pl.pallas_call(
        kernel,
        out_shape=jax.ShapeDtypeStruct((2 * Dout, n_pad), jnp.float32),
        grid_spec=pltpu.PrefetchScalarGridSpec(
            num_scalar_prefetch=0,
            grid=(n_pad // tm,),
            in_specs=[
                pl.BlockSpec((2 * Din, tm), lambda i: (0, i)),        # x (streamed)
                pl.BlockSpec((4 * Dout, 2 * Din), lambda i: (0, 0)),  # W (stationary)
                pl.BlockSpec((4 * Dout, 1), lambda i: (0, 0)),        # bias column
            ],
            out_specs=pl.BlockSpec((2 * Dout, tm), lambda i: (0, i)),
        ),
        compiler_params=pltpu.CompilerParams(
            dimension_semantics=("parallel",)),
    )(x_bigT, w_bigT, b_col)

    out_t = out_t[:, :N]
    return (out_t[:Dout, :] + 1j * out_t[Dout:, :]).T.astype(jnp.complex64)


def _reference(x, w_lin, b_lin, w_so, b_so, omega0, sigma0):
    lin = x @ w_lin.T + b_lin
    sy = x @ w_so.T + b_so
    freq = jnp.exp(1j * omega0 * lin)
    arg = jnp.abs(lin) ** 2 + jnp.abs(sy) ** 2
    gauss = jnp.exp(-sigma0 * sigma0 * arg)
    return (freq * gauss).astype(jnp.complex64)


if __name__ == "__main__":
    # Module config: in_features=16, out_features=32, is_first=False (cfloat),
    # omega0=10.0, sigma0=10.0, bias=True.
    N, Din, Dout = 250, 16, 32          # N not a multiple of the tile on purpose
    omega0, sigma0 = 10.0, 10.0

    key = jax.random.PRNGKey(0)
    ks = jax.random.split(key, 10)

    def cuniform(kr, ki, shape, bound):
        r = jax.random.uniform(kr, shape, minval=-bound, maxval=bound)
        i = jax.random.uniform(ki, shape, minval=-bound, maxval=bound)
        return (r + 1j * i).astype(jnp.complex64)

    # deterministic synthetic parameters (small scale so the Gaussian term is non-trivial)
    bound = 0.05
    w_lin = cuniform(ks[0], ks[1], (Dout, Din), bound)
    b_lin = cuniform(ks[2], ks[3], (Dout,), bound)
    w_so = cuniform(ks[4], ks[5], (Dout, Din), bound)
    b_so = cuniform(ks[6], ks[7], (Dout,), bound)

    # complex input (is_first=False case)
    x = 0.1 * (jax.random.normal(ks[8], (N, Din)) +
               1j * jax.random.normal(ks[9], (N, Din))).astype(jnp.complex64)

    out = complex_gabor_layer_2d(x, w_lin, b_lin, w_so, b_so, omega0, sigma0)
    out = jax.block_until_ready(out)

    ref = _reference(x, w_lin, b_lin, w_so, b_so, omega0, sigma0)

    assert out.shape == (N, Dout) and out.dtype == jnp.complex64
    assert jnp.allclose(out, ref, rtol=1e-4, atol=2e-5), (
        float(jnp.max(jnp.abs(out - ref))))
    print("KERNEL_OK")
</pallas_src>

<mosaic_0001>
module attributes {stable_mosaic.version = 11 : i64} {
  func.func @_gabor_kernel(%arg0: i32, %arg1: memref<32x128xf32, #tpu.memory_space<vmem>>, %arg2: memref<128x32xf32, #tpu.memory_space<vmem>>, %arg3: memref<128x1xf32, #tpu.memory_space<vmem>>, %arg4: memref<64x128xf32, #tpu.memory_space<vmem>>) attributes {dimension_semantics = [#tpu.dimension_semantics<parallel>], iteration_bounds = array<i64: 2>, scalar_prefetch = 0 : i64, scratch_operands = 0 : i64, tpu.core_type = #tpu.core_type<tc>, window_params = [{transform_indices = @transform_0, window_bounds = array<i64: 32, 128>}, {pipeline_mode = #tpu.pipeline_mode<synchronous>, transform_indices = @transform_1, window_bounds = array<i64: 128, 32>}, {pipeline_mode = #tpu.pipeline_mode<synchronous>, transform_indices = @transform_2, window_bounds = array<i64: 128, 1>}, {transform_indices = @transform_3, window_bounds = array<i64: 64, 128>}]} {
    %c0 = arith.constant 0 : index
    %c0_0 = arith.constant 0 : index
    %0 = vector.load %arg2[%c0, %c0_0] : memref<128x32xf32, #tpu.memory_space<vmem>>, vector<128x32xf32>
    %c0_1 = arith.constant 0 : index
    %c0_2 = arith.constant 0 : index
    %1 = vector.load %arg1[%c0_1, %c0_2] : memref<32x128xf32, #tpu.memory_space<vmem>>, vector<32x128xf32>
    %cst = arith.constant dense<0.000000e+00> : vector<128x128xf32>
    %2 = tpu.matmul %0, %1, %cst {dimension_numbers = #tpu.dot_dimension_numbers<[1], [0], [0], [1], [0, 0, 1, 1], [], []>} : vector<128x32xf32>, vector<32x128xf32>, vector<128x128xf32> -> vector<128x128xf32>
    %c0_3 = arith.constant 0 : index
    %c0_4 = arith.constant 0 : index
    %3 = vector.load %arg3[%c0_3, %c0_4] : memref<128x1xf32, #tpu.memory_space<vmem>>, vector<128x1xf32>
    %4 = vector.broadcast %3 : vector<128x1xf32> to vector<128x128xf32>
    %5 = arith.addf %2, %4 : vector<128x128xf32>
    %6 = arith.mulf %5, %5 : vector<128x128xf32>
    %7 = vector.extract_strided_slice %6 {offsets = [0, 0], sizes = [32, 128], strides = [1, 1]} : vector<128x128xf32> to vector<32x128xf32>
    %8 = vector.extract_strided_slice %6 {offsets = [32, 0], sizes = [32, 128], strides = [1, 1]} : vector<128x128xf32> to vector<32x128xf32>
    %9 = arith.addf %7, %8 : vector<32x128xf32>
    %10 = vector.extract_strided_slice %6 {offsets = [64, 0], sizes = [32, 128], strides = [1, 1]} : vector<128x128xf32> to vector<32x128xf32>
    %11 = arith.addf %9, %10 : vector<32x128xf32>
    %12 = vector.extract_strided_slice %6 {offsets = [96, 0], sizes = [32, 128], strides = [1, 1]} : vector<128x128xf32> to vector<32x128xf32>
    %13 = arith.addf %11, %12 : vector<32x128xf32>
    %14 = vector.extract_strided_slice %5 {offsets = [0, 0], sizes = [32, 128], strides = [1, 1]} : vector<128x128xf32> to vector<32x128xf32>
    %15 = vector.extract_strided_slice %5 {offsets = [32, 0], sizes = [32, 128], strides = [1, 1]} : vector<128x128xf32> to vector<32x128xf32>
    %cst_5 = arith.constant -1.000000e+02 : f32
    %16 = vector.broadcast %cst_5 : f32 to vector<32x128xf32>
    %17 = arith.mulf %16, %13 : vector<32x128xf32>
    %cst_6 = arith.constant 1.000000e+01 : f32
    %18 = vector.broadcast %cst_6 : f32 to vector<32x128xf32>
    %19 = arith.mulf %18, %15 : vector<32x128xf32>
    %20 = arith.subf %17, %19 : vector<32x128xf32>
    %21 = math.exp %20 : vector<32x128xf32>
    %cst_7 = arith.constant 1.000000e+01 : f32
    %22 = vector.broadcast %cst_7 : f32 to vector<32x128xf32>
    %23 = arith.mulf %22, %14 : vector<32x128xf32>
    %24 = math.cos %23 : vector<32x128xf32>
    %25 = arith.mulf %21, %24 : vector<32x128xf32>
    %c0_8 = arith.constant 0 : index
    %c0_9 = arith.constant 0 : index
    %26 = vector.load %arg4[%c0_8, %c0_9] : memref<64x128xf32, #tpu.memory_space<vmem>>, vector<32x128xf32>
    tpu.vector_store %arg4[%c0_8, %c0_9], %25 {strides = array<i32>} : memref<64x128xf32, #tpu.memory_space<vmem>>, vector<32x128xf32>,
    %27 = math.sin %23 : vector<32x128xf32>
    %28 = arith.mulf %21, %27 : vector<32x128xf32>
    %c32 = arith.constant 32 : index
    %c0_10 = arith.constant 0 : index
    %29 = vector.load %arg4[%c32, %c0_10] : memref<64x128xf32, #tpu.memory_space<vmem>>, vector<32x128xf32>
    tpu.vector_store %arg4[%c32, %c0_10], %28 {strides = array<i32>} : memref<64x128xf32, #tpu.memory_space<vmem>>, vector<32x128xf32>,
    return
  }
  func.func @transform_0(%arg0: i32) -> (i32, i32) {
    %c0_i32 = arith.constant 0 : i32
    %c0_i32_0 = arith.constant 0 : i32
    return %c0_i32, %arg0 : i32, i32
  }
  func.func @transform_1(%arg0: i32) -> (i32, i32) {
    %c0_i32 = arith.constant 0 : i32
    %c0_i32_0 = arith.constant 0 : i32
    %c0_i32_1 = arith.constant 0 : i32
    return %c0_i32, %c0_i32_0 : i32, i32
  }
  func.func @transform_2(%arg0: i32) -> (i32, i32) {
    %c0_i32 = arith.constant 0 : i32
    %c0_i32_0 = arith.constant 0 : i32
    %c0_i32_1 = arith.constant 0 : i32
    return %c0_i32, %c0_i32_0 : i32, i32
  }
  func.func @transform_3(%arg0: i32) -> (i32, i32) {
    %c0_i32 = arith.constant 0 : i32
    %c0_i32_0 = arith.constant 0 : i32
    return %c0_i32, %arg0 : i32, i32
  }
}

</mosaic_0001>

<bundles_post_ra>
// kernel: tpu_custom_call.1
= control target key start
LH: loop header
LB: loop body
LE: loop exit
PB: predicated region body
PF: predicated region fallthrough
CT: control target
= control target key end

     0   :  { %8 = vsyncpa [#allocation4], 0  ;;  %s2518_s0 = inlined_call_operand.vmem [shape: f32[32,256], index: 0, kind: input, shape index: {}]   ;;  %s2519_s1 = inlined_call_operand.vmem [shape: f32[128,32], index: 1, kind: input, shape index: {}]   ;;  %s2520_s2 = inlined_call_operand.vmem [shape: f32[128,1], index: 2, kind: input, shape index: {}]   ;;  %s2521_s3 = inlined_call_operand.hbm [shape: f32[64,256], index: 3, kind: output, shape index: {}]  }
   0x1   :  { %10 = vsyncpa [#allocation4 + $0x1], 0  ;;  %s1812_s12 = smov 0   ;;  %s1814_s13 = smov 0  }
   0x2   :  { %s1816_s14 = smov 0   ;;  %s1818_s15 = smov 0  }
   0x3 LB: > { %s1501_s16 = sadd.s32 4294967295, %s1779_s15   ;;  %s1502_s17 = sadd.s32 4294967294, %s1779_s15   ;;  %s1779_s15 = sphi %s1818_s15, %s2544_s15   ;;  %s1775_s14 = sphi %s1816_s14, %s2543_s14   ;;  %s1771_s13 = sphi %s1814_s13, %s2542_s13   ;;  %s1767_s12 = sphi %s1812_s12, %s2541_s12  }
   0x4   : > { %s1835_s18 = sadd.s32 1, %s1779_s15   ;;  %s23_s19 = sadd.s32 1, %s1775_s14 }
   0x5   : > { %s20_s20 = ssub.s32 %s1779_s15, %s1835_s18  ;;  %p30_p0 = scmp.ne.s32.totalorder %s1775_s14, %s1771_s13 }
   0x6   : > { %p21_p1 = scmp.eq.s32.totalorder %s20_s20, 0  ;;  %p31_p2 = scmp.eq.s32.totalorder %s1779_s15, 0 }
   0x7   : > { %p102_p3 = scmp.eq.s32.totalorder %s1501_s16, 1  ;;  %p107_p4 = scmp.ne.s32.totalorder %s1771_s13, %s1767_s12 }
   0x8   : > { %s1848_s21 = scalar_select %p21_p1, %s1775_s14, %s23_s19  }
   0x9   : > { %p32_p5 = por %p31_p2, %p30_p0  ;;  %p1850_p6 = por %p102_p3, %p30_p0 }
   0xa   : > { %p108_p7 = scmp.eq.s32.totalorder %s1502_s17, 1  ;;  %p1504_p9 = scmp.ge.s32.totalorder %s1779_s15, 2 }
   0xc   : > { %p1854_p8 = por %p108_p7, %p107_p4  ;;  %130 = sbr.rel (%p1504_p9) target bundleno = 26 (0x1a), region = 24 }
  0x13   : > { %133 = sbr.rel (!%p32_p5) target bundleno = 26 (0x1a), region = 28  ;;  %s135_s24 = sand.u32 (%p32_p5), 1, %s1775_s14  }
  0x14   : > { %s1506_s25 = sshll.u32 (%p32_p5), %s1779_s15, 3  ;;  %s1505_s26 = sshll.u32 (%p32_p5), %s135_s24, 5 }
  0x15   : > { %s139_s29 = scalar_lea.vmem (%p32_p5), %s2518_s0, %s1506_s25  ;;  %s137_s30 = scalar_lea.vmem (%p32_p5), [#allocation2], %s1505_s26 }
  0x16   : > { %v173_v0 = vld [vmem:[%s139_s29] sm:$0xff] (%p32_p5)  ;;  %v175_v1 = vld [vmem:[%s139_s29 + $0x10] sm:$0xff] (%p32_p5) }
  0x17   : > { %v177_v2 = vld [vmem:[%s139_s29 + $0x20] sm:$0xff] (%p32_p5)  ;;  %174 = vst [vmem:[%s137_s30] sm:$0xff] (%p32_p5), %v173_v0  ;;  %176 = vst [vmem:[%s137_s30 + $0x8] sm:$0xff] (%p32_p5), %v175_v1  ;;  %v179_v3 = vld [vmem:[%s139_s29 + $0x30] sm:$0xff] (%p32_p5) }
  0x18   : > { %178 = vst [vmem:[%s137_s30 + $0x10] sm:$0xff] (%p32_p5), %v177_v2  ;;  %180 = vst [vmem:[%s137_s30 + $0x18] sm:$0xff] (%p32_p5), %v179_v3 }
  0x1a PF: > { %p1507_p10 = scmp.ge.s32.totalorder %s1779_s15, 1  ;;  %p185_p11 = scmp.lt.s32.totalorder %s1779_s15, 3 }
  0x1c   : > { %p186_p12 = pnand %p1507_p10, %p185_p11 }
  0x1d   : > { %s1869_s4 = sand.u32 (!%p186_p12), 1, %s1771_s13   ;;  %v215_v4 = vld [vmem:[%s2519_s1] sm:$0xff] (!%p186_p12)  ;;  %vm331_vm0 = vcmask (!%p186_p12), 261120   ;;  %v1781_v6 = vmov (!%p186_p12), 0   ;;  %v237_v13 = vld [vmem:[%s2520_s2 + $0x10] sm:$0xff] (!%p186_p12)  ;;  %v238_v15 = vld [vmem:[%s2520_s2 + $0x18] sm:$0xff] (!%p186_p12) }
  0x1e   : > { %189 = sbr.rel (%p186_p12) target bundleno = 426 (0x1aa), region = 66  ;;  %v223_v5 = vld [vmem:[%s2519_s1 + $0x40] sm:$0xff] (!%p186_p12)  ;;  %s1508_s9 = sshll.u32 (!%p186_p12), %s1869_s4, 5  ;;  %1590 = vmatprep.mubr.msk.f32.mxu0 (!%p186_p12), %vm331_vm0, %v215_v4  ;;  %1692 = vset.pattern.permute.xlu1 (!%p186_p12), %v1781_v6  ;;  %v236_v16 = vld [vmem:[%s2520_s2 + $0x8] sm:$0xff] (!%p186_p12)  ;;  %v217_v19 = vld [vmem:[%s2519_s1 + $0x10] sm:$0xff] (!%p186_p12) }
  0x1f   : > { %1602 = vmatprep.mubr.msk.f32.mxu1 (!%p186_p12), %vm331_vm0, %v223_v5  ;;  %1691 = vset.pattern.permute.xlu0 (!%p186_p12), %v1781_v6  ;;  %s194_s10 = scalar_lea.vmem (!%p186_p12), [#allocation2], %s1508_s9  ;;  %v235_v14 = vld [vmem:[%s2520_s2] sm:$0xff] (!%p186_p12)  ;;  %v216_v17 = vld [vmem:[%s2519_s1 + $0x8] sm:$0xff] (!%p186_p12)  ;;  %v225_v20 = vld [vmem:[%s2519_s1 + $0x50] sm:$0xff] (!%p186_p12)  ;;  %s1509_s29 = sshll.u32 (!%p186_p12), %s1869_s4, 6 }
  0x20   : > { %v231_v7 = vld [vmem:[%s194_s10] sm:$0xff] (!%p186_p12)  ;;  %v232_v8 = vld [vmem:[%s194_s10 + $0x8] sm:$0xff] (!%p186_p12)  ;;  %v233_v9 = vld [vmem:[%s194_s10 + $0x10] sm:$0xff] (!%p186_p12)  ;;  %263 = vperm.xlu1 (!%p186_p12), %1692, %v237_v13   ;;  %253 = vperm.xlu0 (!%p186_p12), %1691, %v235_v14   ;;  %s2432_s30 = scalar_lea.vmem (!%p186_p12), [#allocation3], %s1509_s29  ;;  %s1559_s6 = sshll.u32 (!%p186_p12), %s1501_s16, 7 }
  0x21   : > { %v1614_v10 = vpack.c.bf16 (!%p186_p12), %v232_v8, %v231_v7  ;;  %v234_v11 = vld [vmem:[%s194_s10 + $0x18] sm:$0xff] (!%p186_p12)  ;;  %v224_v18 = vld [vmem:[%s2519_s1 + $0x48] sm:$0xff] (!%p186_p12)  ;;  %v239_v22 = vld [vmem:[%s2520_s2 + $0x20] sm:$0xff] (!%p186_p12)  ;;  %s1434_s5 = sshll.u32 (!%p186_p12), %s2432_s30, 4  ;;  %s2472_s8 = scalar_lea.hbm (!%p186_p12), %s2521_s3, %s1559_s6  ;;  %s2466_s5 = int_to_ptr.vmem [resolvable:$true] %s1434_s5 }
  0x22   : > { %v1618_v12 = vpack.c.bf16 (!%p186_p12), %v234_v11, %v233_v9  ;;  %v240_v21 = vld [vmem:[%s2520_s2 + $0x28] sm:$0xff] (!%p186_p12)  ;;  %v218_v23 = vld [vmem:[%s2519_s1 + $0x18] sm:$0xff] (!%p186_p12)  ;;  %v219_v25 = vld [vmem:[%s2519_s1 + $0x20] sm:$0xff] (!%p186_p12)  ;;  %s1422_s9 = scalar_lea.sflag (!%p186_p12), [#allocation4], %s1869_s4  ;;  %s1717_s10 = scalar_lea.vmem (!%p186_p12), %s2466_s5, 1024 }
  0x23   : > { %1615 = vmatprep.subr.bf16.mxu0 (!%p186_p12), %v1614_v10  ;;  %1622 = vmatprep.subr.bf16.mxu1 (!%p186_p12), %v1614_v10  ;;  %v226_v24 = vld [vmem:[%s2519_s1 + $0x58] sm:$0xff] (!%p186_p12)  ;;  %v227_v26 = vld [vmem:[%s2519_s1 + $0x60] sm:$0xff] (!%p186_p12)  ;;  %v241_v28 = vld [vmem:[%s2520_s2 + $0x30] sm:$0xff] (!%p186_p12)  ;;  %p1718_p13 = scmp.ne.s32.totalorder (!%p186_p12), %s2466_s5, %s1717_s10  ;;  %s1788_s11 = smov (!%p186_p12), [#allocation3]  }
  0x24   : > { %1617 = vmatpush3.bf16.msra.mxu0 (!%p186_p12), %v1614_v10  ;;  %1624 = vmatpush3.bf16.msra.mxu1 (!%p186_p12), %v1614_v10  ;;  %v242_v27 = vld [vmem:[%s2520_s2 + $0x38] sm:$0xff] (!%p186_p12)  ;;  %v220_v29 = vld [vmem:[%s2519_s1 + $0x28] sm:$0xff] (!%p186_p12)  ;;  %v221_v31 = vld [vmem:[%s2519_s1 + $0x30] sm:$0xff] (!%p186_p12)  ;;  %s1721_s17 = sshll.u32 (!%p186_p12), %s1788_s11, 4  ;;  %s1722_s17 = int_to_ptr.vmem [resolvable:$false] %s1721_s17 }
  0x25   : > { %1619 = vmatprep.subr.bf16.mxu0 %v1618_v12  ;;  %1623 = vmatprep.subr.bf16.mxu1 %v1618_v12  ;;  %v228_v30 = vld [vmem:[%s2519_s1 + $0x68] sm:$0xff]  ;;  %v229_v32 = vld [vmem:[%s2519_s1 + $0x70] sm:$0xff]  ;;  %v243_v34 = vld [vmem:[%s2520_s2 + $0x40] sm:$0xff]  ;;  %p1719_p0 = pnand %p1718_p13, %p1850_p6  ;;  %s1723_s19 = scalar_lea.vmem %s1722_s17, 2048 }
  0x26   : > { %268 = vperm.xlu1 %1692, %v238_v15   ;;  %258 = vperm.xlu0 %1691, %v236_v16   ;;  %v244_v33 = vld [vmem:[%s2520_s2 + $0x48] sm:$0xff]  ;;  %v222_v35 = vld [vmem:[%s2519_s1 + $0x38] sm:$0xff]  ;;  %v245_v38 = vld [vmem:[%s2520_s2 + $0x50] sm:$0xff]  ;;  %p1724_p2 = scmp.lt.s32.totalorder %s2466_s5, %s1722_s17  ;;  %p1725_p3 = scmp.lt.s32.totalorder %s1723_s19, %s1717_s10 }
  0x27   : > { %v230_v36 = vld [vmem:[%s2519_s1 + $0x78] sm:$0xff]  ;;  %v248_v39 = vld [vmem:[%s2520_s2 + $0x68] sm:$0xff]  ;;  %v247_v40 = vld [vmem:[%s2520_s2 + $0x60] sm:$0xff]  ;;  %p1720_p1 = pneg %p1719_p0 }
  0x28   : > { %1621 = vmatpush3.bf16.msra.mxu0 %v1618_v12  ;;  %1625 = vmatpush3.bf16.msra.mxu1 %v1618_v12  ;;  %v246_v37 = vld [vmem:[%s2520_s2 + $0x58] sm:$0xff]  ;;  %v249_v42 = vld [vmem:[%s2520_s2 + $0x70] sm:$0xff]  ;;  %p1726_p4 = por %p1725_p3, %p1724_p2 }
  0x29   : > { %v250_v41 = vld [vmem:[%s2520_s2 + $0x78] sm:$0xff] }
  0x2a   : > { %278 = vperm.xlu1 %1692, %v240_v21   ;;  %273 = vperm.xlu0 %1691, %v239_v22   ;;  %p1727_p5 = pnand %p1726_p4, %p1720_p1 }
  0x2b   : > { %1591 = vmatmul.mubr.msk.f32.vlgmr.msra.gmra.mrb[0].mxu0 %vm331_vm0, %v216_v17  ;;  %1603 = vmatmul.mubr.msk.f32.vlgmr.msra.gmra.mrb[0].mxu1 %vm331_vm0, %v224_v18 }
  0x2c   : > { %1593 = vmatprep.mubr.msk.f32.mxu0 %vm331_vm0, %v217_v19  ;;  %1605 = vmatprep.mubr.msk.f32.mxu1 %vm331_vm0, %v225_v20 }
  0x2e   : > { %288 = vperm.xlu1 %1692, %v242_v27   ;;  %283 = vperm.xlu0 %1691, %v241_v28  }
  0x2f   : > { %1594 = vmatmul.mubr.msk.f32.gmra.mrb[2].mxu0 %vm331_vm0, %v218_v23  ;;  %1606 = vmatmul.mubr.msk.f32.gmra.mrb[2].mxu1 %vm331_vm0, %v226_v24 }
  0x30   : > { %1596 = vmatprep.mubr.msk.f32.mxu0 %vm331_vm0, %v219_v25  ;;  %1608 = vmatprep.mubr.msk.f32.mxu1 %vm331_vm0, %v227_v26 }
  0x32   : > { %298 = vperm.xlu1 %1692, %v244_v33   ;;  %293 = vperm.xlu0 %1691, %v243_v34   ;;  %v2523_v33 = vmov 2475754826  }
  0x33   : > { %1597 = vmatmul.mubr.msk.f32.gmra.mrb[4].mxu0 %vm331_vm0, %v220_v29  ;;  %1609 = vmatmul.mubr.msk.f32.gmra.mrb[4].mxu1 %vm331_vm0, %v228_v30  ;;  %v1782_v29 = vmov 683565275  }
  0x34   : > { %1599 = vmatprep.mubr.msk.f32.mxu0 %vm331_vm0, %v221_v31  ;;  %1611 = vmatprep.mubr.msk.f32.mxu1 %vm331_vm0, %v229_v32 }
  0x36   : > { %308 = vperm.xlu1 %1692, %v246_v37   ;;  %303 = vperm.xlu0 %1691, %v245_v38   ;;  %v2525_v37 = vmov 2102212464  }
  0x37   : > { %1600 = vmatmul.mubr.msk.f32.gmra.mrb[6].mxu0 %vm331_vm0, %v222_v35  ;;  %1612 = vmatmul.mubr.msk.f32.gmra.mrb[6].mxu1 %vm331_vm0, %v230_v36  ;;  %v2527_v35 = vmov 2131351028  }
  0x3a   : > { %318 = vperm.xlu1 %1692, %v248_v39   ;;  %313 = vperm.xlu0 %1691, %v247_v40   ;;  %v1786_v39 = vmov 920167782  }
  0x3e   : > { %328 = vperm.xlu1 %1692, %v250_v41   ;;  %323 = vperm.xlu0 %1691, %v249_v42  }
  0x9f   : > { %v254_v43 = vpop.permute.xlu0 %253  ;;  %v1984_v44 = vpop.permute.xlu1 %263 }
  0xa5   : > { %v259_v45 = vpop.permute.xlu0 %258  ;;  %v269_v60 = vpop.permute.xlu1 %268 }
  0xfe   : > { %v1592_v46 = vpop.f32.mrb[0].mxu0  ;;  %v1986_v47 = vpop.f32.mrb[0].mxu1 }
  0xff   : > { %v1988_v48 = vadd.f32 %v1592_v46, %v259_v45  ;;  %v446_v49 = vpop.f32.mrb[1].mxu0  ;;  %v1990_v50 = vpop.f32.mrb[1].mxu1 }
 0x100   : > { %v1992_v51 = vadd.f32 %v446_v49, %v254_v43  ;;  %v1787_v49 = vmov 1326507024  }
 0x101   : > { %v1995_v52 = vmul.f32 10.0, %v1988_v48 }
 0x102   : > { %v1998_v53 = vmul.f32 10.0, %v1992_v51  ;;  %v1595_v54 = vpop.f32.mrb[2].mxu0  ;;  %v2000_v55 = vpop.f32.mrb[2].mxu1 }
 0x103   : > { %v680_v56 = vand.u32 2147483647, %v1995_v52  ;;  %v683_v57 = vand.u32 2139095040, %v1995_v52  ;;  %v2004_v58 = vpop.f32.mrb[3].mxu0  ;;  %v2006_v59 = vpop.f32.mrb[3].mxu1  ;;  %v2010_v0 = vadd.f32 %v1595_v54, %v269_v60  ;;  %vm682_vm15 = vcmp.lt.s32.totalorder %v1995_v52, 0 }
 0x104   : > { %v577_v61 = vand.u32 2147483647, %v1998_v53  ;;  %v580_v62 = vand.u32 2139095040, %v1998_v53 }
 0x105   : > { %v684_v63 = vshrl.u32 %v683_v57, 23  ;;  %v687_v1 = vand.u32 8388607, %v680_v56  ;;  %v2019_v6 = vmul.f32 10.0, %v2010_v0  ;;  %vm2144_vm14 = vcmp.le.f32.partialorder %v680_v56, 0.7853982 }
 0x106   : > { %v581_v2 = vshrl.u32 %v580_v62, 23  ;;  %v584_v3 = vand.u32 8388607, %v577_v61  ;;  %v2016_v4 = vpop.f32.mrb[4].mxu0  ;;  %v2021_v7 = vpop.f32.mrb[4].mxu1 }
 0x107   : > { %v1530_v5 = vadd.s32 4294967169, %v684_v63  ;;  %v2023_v8 = vpop.f32.mrb[5].mxu0  ;;  %v2025_v10 = vpop.f32.mrb[5].mxu1  ;;  %v688_v12 = vor.u32 8388608, %v687_v1  ;;  %v889_v15 = vand.u32 2139095040, %v2019_v6 }
 0x108   : > { %v1526_v9 = vadd.s32 4294967169, %v581_v2  ;;  %v585_v13 = vor.u32 8388608, %v584_v3 }
 0x109   : > { %v690_v11 = vadd.s32 1, %v1530_v5  ;;  %v890_v20 = vshrl.u32 %v889_v15, 23  ;;  %v2036_v25 = vshll.u32 %v688_v12, 8 }
 0x10a   : > { %v587_v14 = vadd.s32 1, %v1526_v9  ;;  %v2028_v16 = vpop.f32.mrb[6].mxu0  ;;  %v2030_v17 = vpop.f32.mrb[6].mxu1  ;;  %v2040_v27 = vshll.u32 %v585_v13, 8 }
 0x10b   : > { %vm691_vm1 = vcmp.gt.s32.totalorder %v690_v11, 0  ;;  %v2032_v18 = vpop.f32.mrb[7].mxu0  ;;  %v2034_v21 = vpop.f32.mrb[7].mxu1  ;;  %v2043_v32 = vadd.s32 4294967169, %v890_v20 }
 0x10c   : > { %v692_v19 = vsel %vm691_vm1, %v690_v11, 0  ;;  %vm588_vm2 = vcmp.gt.s32.totalorder %v587_v14, 0 }
 0x10d   : > { %v693_v22 = vshrl.u32 %v692_v19, 5  ;;  %v694_v23 = vand.u32 31, %v692_v19  ;;  %v589_v24 = vsel %vm588_vm2, %v587_v14, 0 }
 0x10e   : > { %v2038_v26 = vshrl.u32 %v589_v24, 5  ;;  %v591_v31 = vand.u32 31, %v589_v24 }
 0x10f   : > { %v695_v28 = vsub.s32 32, %v694_v23  ;;  %v697_v30 = vshll.u32 %v1782_v29, %v694_v23  ;;  %v700_v34 = vshll.u32 %v2523_v33, %v694_v23  ;;  %v703_v36 = vshll.u32 %v2527_v35, %v694_v23 }
 0x110   : > { %v706_v38 = vshll.u32 %v2525_v37, %v694_v23  ;;  %v709_v40 = vshll.u32 %v1786_v39, %v694_v23  ;;  %vm712_vm3 = vcmp.lt.s32.totalorder %v693_v22, 1  ;;  %vm713_vm4 = vcmp.lt.s32.totalorder %v693_v22, 2 }
 0x111   : > { %v698_v41 = vshrl.u32 %v2523_v33, %v695_v28  ;;  %v701_v42 = vshrl.u32 %v2527_v35, %v695_v28  ;;  %v704_v43 = vshrl.u32 %v2525_v37, %v695_v28  ;;  %v696_v45 = vshrl.u32 %v1782_v29, %v695_v28 }
 0x112   : > { %v707_v46 = vshrl.u32 %v1786_v39, %v695_v28  ;;  %v710_v54 = vshrl.u32 %v1787_v49, %v695_v28  ;;  %v592_v63 = vsub.s32 32, %v591_v31  ;;  %vm714_vm5 = vcmp.lt.s32.totalorder %v693_v22, 3 }
 0x113   : > { %v699_v57 = vor.u32 %v698_v41, %v697_v30  ;;  %v702_v60 = vor.u32 %v701_v42, %v700_v34  ;;  %v705_v62 = vor.u32 %v704_v43, %v703_v36  ;;  %vm715_vm6 = vcmp.lt.s32.totalorder %v693_v22, 4 }
 0x114   : > { %v708_v1 = vor.u32 %v707_v46, %v706_v38  ;;  %v711_v2 = vor.u32 %v710_v54, %v709_v40  ;;  %v594_v15 = vshll.u32 %v1782_v29, %v591_v31  ;;  %v595_v23 = vshrl.u32 %v2523_v33, %v592_v63 }
 0x115   : > { %v716_v3 = vsel %vm712_vm3, %v696_v45, %v699_v57  ;;  %v717_v5 = vsel %vm715_vm6, %v705_v62, 2102212464  ;;  %v720_v9 = vsel %vm712_vm3, %v699_v57, %v702_v60  ;;  %v724_v11 = vsel %vm712_vm3, %v702_v60, %v705_v62 }
 0x116   : > { %v718_v12 = vsel %vm714_vm5, %v702_v60, %v717_v5  ;;  %v721_v13 = vsel %vm715_vm6, %v708_v1, 920167782  ;;  %v725_v14 = vsel %vm715_vm6, %v711_v2, 1326507024  ;;  %v597_v24 = vshll.u32 %v2523_v33, %v591_v31 }
 0x117   : > { %v722_v19 = vsel %vm714_vm5, %v705_v62, %v721_v13  ;;  %v726_v20 = vsel %vm714_vm5, %v708_v1, %v725_v14  ;;  %v719_v28 = vsel %vm713_vm4, %v716_v3, %v718_v12  ;;  %v598_v36 = vshrl.u32 %v2527_v35, %v592_v63  ;;  %v2080_v1 = vpop.permute.xlu1 %278 }
 0x118   : > { %v723_v30 = vsel %vm713_vm4, %v720_v9, %v722_v19  ;;  %v727_v34 = vsel %vm713_vm4, %v724_v11, %v726_v20  ;;  %v596_v43 = vor.u32 %v595_v23, %v594_v15  ;;  %v600_v46 = vshll.u32 %v2527_v35, %v591_v31 }
 0x119   : > { %v2066_v38 = vmul.u32.u64.low %v2036_v25, %v727_v34  ;;  %v2067_v40 = vmul.u32.u64.high %v2036_v25, %v727_v34, %v2066_v38  ;;  %v2070_v41 = vmul.u32.u64.low %v2036_v25, %v723_v30  ;;  %v2071_v42 = vmul.u32.u64.high %v2036_v25, %v723_v30, %v2070_v41 }
 0x11a   : > { %v599_v45 = vor.u32 %v598_v36, %v597_v24  ;;  %v601_v54 = vshrl.u32 %v2525_v37, %v592_v63  ;;  %v593_v22 = vshrl.u32 %v1782_v29, %v592_v63  ;;  %v603_v57 = vshll.u32 %v2525_v37, %v591_v31 }
 0x11b   : > { %v604_v60 = vshrl.u32 %v1786_v39, %v592_v63  ;;  %v607_v62 = vshrl.u32 %v1787_v49, %v592_v63  ;;  %v735_v2 = vmul.u32 %v2036_v25, %v719_v28  ;;  %v606_v5 = vshll.u32 %v1786_v39, %v591_v31  ;;  %v2091_v25 = vpop.permute.xlu0 %273  ;;  %v2097_v38 = vpop.permute.xlu1 %288 }
 0x11c   : > { %v602_v3 = vor.u32 %v601_v54, %v600_v46  ;;  %vm609_vm7 = vcmp.lt.s32.totalorder %v2038_v26, 1  ;;  %vm737_vm8 = vc.u32 %v2067_v40, %v2070_v41  ;;  %v738_v9 = vadd.s32 1, %v2071_v42 }
 0x11d   : > { %v605_v11 = vor.u32 %v604_v60, %v603_v57  ;;  %vm610_vm9 = vcmp.lt.s32.totalorder %v2038_v26, 2  ;;  %v608_v12 = vor.u32 %v607_v62, %v606_v5  ;;  %vm611_vm10 = vcmp.lt.s32.totalorder %v2038_v26, 3 }
 0x11e   : > { %vm612_vm11 = vcmp.lt.s32.totalorder %v2038_v26, 4  ;;  %v617_v63 = vsel %vm609_vm7, %v596_v43, %v599_v45  ;;  %v739_v31 = vsel %vm737_vm8, %v738_v9, %v2071_v42  ;;  %v621_v15 = vsel %vm609_vm7, %v599_v45, %v602_v3 }
 0x11f   : > { %v614_v13 = vsel %vm612_vm11, %v602_v3, 2102212464  ;;  %v618_v14 = vsel %vm612_vm11, %v605_v11, 920167782  ;;  %v740_v19 = vadd.s32 %v739_v31, %v735_v2  ;;  %v613_v20 = vsel %vm609_vm7, %v593_v22, %v596_v43  ;;  %v2113_v2 = vpop.permute.xlu0 %283 }
 0x120   : > { %v619_v23 = vsel %vm611_vm10, %v602_v3, %v618_v14  ;;  %v622_v24 = vsel %vm612_vm11, %v608_v12, 1326507024  ;;  %v615_v28 = vsel %vm611_vm10, %v599_v45, %v614_v13  ;;  %v896_v36 = vadd.s32 1, %v2043_v32 }
 0x121   : > { %v620_v30 = vsel %vm610_vm9, %v617_v63, %v619_v23  ;;  %v623_v34 = vsel %vm611_vm10, %v605_v11, %v622_v24  ;;  %v741_v46 = vadd.s32 536870912, %v740_v19  ;;  %v2522_v22 = vand.u32 2147483647, %v2019_v6  ;;  %v299_v63 = vpop.permute.xlu1 %298 }
 0x122   : > { %v624_v42 = vsel %vm610_vm9, %v621_v15, %v623_v34  ;;  %v2102_v54 = vmul.u32.u64.low %v2040_v27, %v620_v30  ;;  %v2103_v57 = vmul.u32.u64.high %v2040_v27, %v620_v30, %v2102_v54  ;;  %vm897_vm12 = vcmp.gt.s32.totalorder %v896_v36, 0 }
 0x123   : > { %v2107_v43 = vmul.u32.u64.low %v2040_v27, %v624_v42  ;;  %v2108_v45 = vmul.u32.u64.high %v2040_v27, %v624_v42, %v2107_v43  ;;  %v742_v60 = vshrl.u32 %v741_v46, 30  ;;  %v616_v32 = vsel %vm610_vm9, %v613_v20, %v615_v28  ;;  %v294_v23 = vpop.permute.xlu0 %293 }
 0x124   : > { %v898_v62 = vsel %vm897_vm12, %v896_v36, 0  ;;  %v635_v5 = vadd.s32 1, %v2103_v57  ;;  %v632_v11 = vmul.u32 %v2040_v27, %v616_v32  ;;  %v893_v12 = vand.u32 8388607, %v2522_v22 }
 0x125   : > { %v743_v3 = vshll.u32 %v742_v60, 30  ;;  %v900_v9 = vand.u32 31, %v898_v62  ;;  %vm634_vm13 = vc.u32 %v2108_v45, %v2102_v54  ;;  %v492_v13 = vadd.f32 %v1986_v47, %v299_v63 }
 0x126   : > { %v636_v26 = vsel %vm634_vm13, %v635_v5, %v2103_v57  ;;  %v894_v28 = vor.u32 8388608, %v893_v12  ;;  %v2125_v27 = vadd.f32 %v2004_v58, %v1984_v44  ;;  %v2129_v30 = vmul.f32 %v1988_v48, %v1988_v48 }
 0x127   : > { %v744_v31 = vsub.s32 %v740_v19, %v743_v3  ;;  %v637_v14 = vadd.s32 %v636_v26, %v632_v11  ;;  %v901_v20 = vsub.s32 32, %v900_v9  ;;  %v2132_v19 = vadd.f32 %v1990_v50, %v294_v23 }
 0x128   : > { %v766_v36 = vsub.s32 4, %v742_v60  ;;  %v2134_v47 = vmul.f32 %v492_v13, %v492_v13  ;;  %v2138_v46 = vmul.f32 %v1992_v51, %v1992_v51  ;;  %v736_v58 = vadd.s32 %v2070_v41, %v2067_v40 }
 0x129   : > { %v746_v15 = vsub.s32 0, %v744_v31  ;;  %v638_v24 = vadd.s32 536870912, %v637_v14  ;;  %v904_v50 = vshrl.u32 %v2523_v33, %v901_v20  ;;  %v2153_v51 = vshll.u32 %v894_v28, 8 }
 0x12a   : > { %v2156_v43 = vmul.f32 10.0, %v2125_v27  ;;  %v903_v56 = vshll.u32 %v1782_v29, %v900_v9  ;;  %v907_v3 = vshrl.u32 %v2527_v35, %v901_v20  ;;  %v913_v5 = vshrl.u32 %v1786_v39, %v901_v20 }
 0x12b   : > { %v1531_v34 = vmin.u32 %v746_v15, %v744_v31  ;;  %v2140_v42 = vshrl.u32 %v638_v24, 30  ;;  %v767_v11 = vsel %vm682_vm15, %v766_v36, %v742_v60  ;;  %v2165_v40 = vshrl.u32 %v898_v62, 5 }
 0x12c   : > { %v906_v41 = vshll.u32 %v2523_v33, %v900_v9  ;;  %v905_v63 = vor.u32 %v904_v50, %v903_v56  ;;  %v910_v26 = vshrl.u32 %v2525_v37, %v901_v20  ;;  %v912_v13 = vshll.u32 %v2525_v37, %v900_v9 }
 0x12d   : > { %v748_v48 = vclz %v1531_v34  ;;  %v640_v57 = vshll.u32 %v2140_v42, 30  ;;  %v909_v24 = vshll.u32 %v2527_v35, %v900_v9  ;;  %v916_v28 = vshrl.u32 %v1787_v49, %v901_v20 }
 0x12e   : > { %v908_v34 = vor.u32 %v907_v3, %v906_v41  ;;  %v914_v62 = vor.u32 %v913_v5, %v912_v13  ;;  %v769_v36 = vsel %vm2144_vm14, 0, %v767_v11  ;;  %v915_v50 = vshll.u32 %v1786_v39, %v900_v9 }
 0x12f   : > { %v1532_v32 = vadd.s32 4294967294, %v748_v48  ;;  %v2163_v12 = vsub.s32 %v637_v14, %v640_v57  ;;  %v786_v57 = vand.u32 2139095040, %v2156_v43  ;;  %v911_v33 = vor.u32 %v910_v26, %v909_v24 }
 0x130   : > { %v917_v35 = vor.u32 %v916_v28, %v915_v50  ;;  %vm918_vm1 = vcmp.lt.s32.totalorder %v2165_v40, 1  ;;  %vm921_vm2 = vcmp.lt.s32.totalorder %v2165_v40, 4  ;;  %vm919_vm3 = vcmp.lt.s32.totalorder %v2165_v40, 2 }
 0x131   : > { %vm1533_vm0 = vcmp.lt.s32.totalorder %v1532_v32, 0  ;;  %v643_v23 = vsub.s32 0, %v2163_v12  ;;  %v926_v11 = vsel %vm918_vm1, %v905_v63, %v908_v34  ;;  %v927_v9 = vsel %vm921_vm2, %v914_v62, 920167782 }
 0x132   : > { %v751_v15 = vsel %vm1533_vm0, 0, %v1532_v32  ;;  %vm920_vm4 = vcmp.lt.s32.totalorder %v2165_v40, 3  ;;  %v923_v26 = vsel %vm921_vm2, %v911_v33, 2102212464  ;;  %v930_v13 = vsel %vm918_vm1, %v908_v34, %v911_v33 }
 0x133   : > { %v752_v60 = vsub.s32 32, %v751_v15  ;;  %v756_v14 = vsub.s32 4294967266, %v751_v15  ;;  %v1527_v48 = vmin.u32 %v643_v23, %v2163_v12  ;;  %v753_v32 = vshll.u32 %v744_v31, %v751_v15 }
 0x134   : > { %v902_v31 = vshrl.u32 %v1782_v29, %v901_v20  ;;  %vm579_vm5 = vcmp.lt.s32.totalorder %v1998_v53, 0  ;;  %v931_v20 = vsel %vm921_vm2, %v917_v35, 1326507024  ;;  %vm2244_vm9 = vcmp.le.f32.partialorder %v577_v61, 0.7853982 }
 0x135   : > { %v754_v56 = vshrl.u32 %v736_v58, %v752_v60  ;;  %v757_v22 = vadd.s32 127, %v756_v14  ;;  %v645_v37 = vclz %v1527_v48  ;;  %v932_v28 = vsel %vm920_vm4, %v914_v62, %v931_v20 }
 0x136   : > { %v787_v60 = vshrl.u32 %v786_v57, 23  ;;  %v924_v48 = vsel %vm920_vm4, %v908_v34, %v923_v26  ;;  %v933_v50 = vsel %vm919_vm3, %v930_v13, %v932_v28  ;;  %v663_v34 = vsub.s32 4, %v2140_v42 }
 0x137   : > { %v755_v3 = vor.u32 %v754_v56, %v753_v32  ;;  %v758_v5 = vshll.u32 %v757_v22, 23  ;;  %v1528_v41 = vadd.s32 4294967294, %v645_v37  ;;  %v928_v22 = vsel %vm920_vm4, %v911_v33, %v927_v9 }
 0x138   : > { %v929_v37 = vsel %vm919_vm3, %v926_v11, %v928_v22  ;;  %v922_v33 = vsel %vm918_vm1, %v902_v31, %v905_v63  ;;  %v2207_v56 = vmul.u32.u64.low %v2153_v51, %v933_v50  ;;  %v2208_v35 = vmul.u32.u64.high %v2153_v51, %v933_v50, %v2207_v56 }
 0x139   : > { %v759_v58 = vor.u32 4788187, %v758_v5  ;;  %v762_v15 = vcvt.s32.f32 %v755_v3  ;;  %vm1529_vm6 = vcmp.lt.s32.totalorder %v1528_v41, 0  ;;  %v1534_v3 = vadd.s32 4294967169, %v787_v60  ;;  %v309_v5 = vpop.permute.xlu1 %308 }
 0x13a   : > { %v648_v24 = vsel %vm1529_vm6, 0, %v1528_v41  ;;  %v2211_v57 = vmul.u32.u64.low %v2153_v51, %v929_v37  ;;  %v2212_v9 = vmul.u32.u64.high %v2153_v51, %v929_v37, %v2211_v57  ;;  %v502_v41 = vadd.f32 %v2000_v55, %v309_v5  ;;  %v304_v5 = vpop.permute.xlu0 %303 }
 0x13b   : > { %v760_v23 = vand.u32 2147483647, %v759_v58  ;;  %v653_v14 = vsub.s32 4294967266, %v648_v24  ;;  %v649_v11 = vsub.s32 32, %v648_v24  ;;  %v793_v31 = vadd.s32 1, %v1534_v3 }
 0x13c   : > { %v633_v58 = vadd.s32 %v2102_v54, %v2108_v45  ;;  %v925_v22 = vsel %vm919_vm3, %v922_v33, %v924_v48  ;;  %v783_v13 = vand.u32 2147483647, %v2156_v43  ;;  %v1194_v37 = vadd.s32 3, %v769_v36 }
 0x13d   : > { %v763_v32 = vmul.f32 %v762_v15, %v760_v23  ;;  %v654_v62 = vadd.s32 127, %v653_v14  ;;  %vm943_vm7 = vc.u32 %v2208_v35, %v2211_v57  ;;  %vm794_vm8 = vcmp.gt.s32.totalorder %v793_v31, 0 }
 0x13e   : > { %v2229_v20 = vand.u32 3, %v769_v36  ;;  %v651_v54 = vshrl.u32 %v633_v58, %v649_v11  ;;  %v944_v45 = vadd.s32 1, %v2212_v9  ;;  %v664_v40 = vsel %vm579_vm5, %v663_v34, %v2140_v42 }
 0x13f   : > { %v764_v63 = vxor.u32 2147483648, %v763_v32  ;;  %v655_v26 = vshll.u32 %v654_v62, 23  ;;  %v941_v23 = vmul.u32 %v2153_v51, %v925_v22  ;;  %v795_v28 = vsel %vm794_vm8, %v793_v31, 0 }
 0x140   : > { %v650_v60 = vshll.u32 %v2163_v12, %v648_v24  ;;  %v945_v44 = vsel %vm943_vm7, %v944_v45, %v2212_v9  ;;  %v1195_v33 = vand.u32 3, %v1194_v37  ;;  %v2240_v36 = vmul.f32 %v2132_v19, %v2132_v19 }
 0x141   : > { %v765_v15 = vsel %vm682_vm15, %v764_v63, %v763_v32  ;;  %v656_v14 = vor.u32 4788187, %v655_v26  ;;  %v946_v48 = vadd.s32 %v945_v44, %v941_v23  ;;  %v797_v50 = vand.u32 31, %v795_v28 }
 0x142   : > { %v768_v55 = vsel %vm2144_vm14, %v1995_v52, %v765_v15  ;;  %v652_v51 = vor.u32 %v651_v54, %v650_v60  ;;  %v2250_v12 = vmul.f32 %v2010_v0, %v2010_v0  ;;  %v2254_v24 = vand.u32 8388607, %v783_v13 }
 0x143   : > { %1693 = vcosq.f32 %v768_v55  ;;  %v2258_v19 = vsel %vm2244_vm9, 0, %v664_v40  ;;  %v947_v32 = vadd.s32 536870912, %v946_v48  ;;  %v2260_v56 = vmul.f32 %v502_v41, %v502_v41 }
 0x144   : > { %1695 = vsinq.f32 %v768_v55  ;;  %v798_v61 = vsub.s32 32, %v797_v50  ;;  %vm775_vm10 = vcmp.eq.s32.totalorder %v2229_v20, 0  ;;  %vm778_vm11 = vcmp.eq.s32.totalorder %v2229_v20, 2 }
 0x145   : > { %v657_v3 = vand.u32 2147483647, %v656_v14  ;;  %v2266_v0 = vmul.f32 %v2125_v27, %v2125_v27  ;;  %vm774_vm12 = vcmp.lt.s32.totalorder %v2229_v20, 2  ;;  %vm1196_vm13 = vcmp.lt.s32.totalorder %v1195_v33, 2 }
 0x146   : > { %vm1197_vm14 = vcmp.eq.s32.totalorder %v1195_v33, 0  ;;  %vm1200_vm15 = vcmp.eq.s32.totalorder %v1195_v33, 2  ;;  %v2269_v11 = vshrl.u32 %v947_v32, 30  ;;  %vm772_vm0 = vweird.f32 %v1995_v52 }
 0x147   : > { %v659_v62 = vcvt.s32.f32 %v652_v51  ;;  %v2273_v9 = vand.u32 3, %v2258_v19  ;;  %v791_v63 = vor.u32 8388608, %v2254_v24  ;;  %v2277_v34 = vadd.f32 %v2006_v59, %v304_v5 }
 0x148   : > { %v949_v27 = vshll.u32 %v2269_v11, 30  ;;  %v2535_v41 = vmov 2131351028   ;;  %v2536_v58 = vmov 2102212464   ;;  %v2284_v22 = vadd.f32 %v2016_v4, %v2080_v1 }
 0x149   : > { %v804_v31 = vshrl.u32 %v2535_v41, %v798_v61  ;;  %v807_v26 = vshrl.u32 %v2536_v58, %v798_v61  ;;  %v660_v15 = vmul.f32 %v659_v62, %v657_v3  ;;  %v2286_v37 = vshrl.u32 %v795_v28, 5 }
 0x14a   : > { %v810_v55 = vshrl.u32 %v1786_v39, %v798_v61  ;;  %v813_v54 = vshrl.u32 %v1787_v49, %v798_v61  ;;  %v2290_v59 = vsub.s32 %v946_v48, %v949_v27  ;;  %v800_v40 = vshll.u32 %v1782_v29, %v797_v50 }
 0x14b   : > { %v2537_v23 = vmov 2475754826   ;;  %v806_v14 = vshll.u32 %v2535_v41, %v797_v50  ;;  %v809_v1 = vshll.u32 %v2536_v58, %v797_v50  ;;  %v812_v28 = vshll.u32 %v1786_v39, %v797_v50 }
 0x14c   : > { %v803_v60 = vshll.u32 %v2537_v23, %v797_v50  ;;  %v801_v4 = vshrl.u32 %v2537_v23, %v798_v61  ;;  %v952_v49 = vsub.s32 0, %v2290_v59  ;;  %v530_v39 = vmul.f32 %v2284_v22, %v2284_v22 }
 0x14d   : > { %v1694_v45 = vpop.eup %1693  ;;  %v808_v48 = vor.u32 %v807_v26, %v806_v14  ;;  %v811_v62 = vor.u32 %v810_v55, %v809_v1  ;;  %v814_v27 = vor.u32 %v813_v54, %v812_v28  ;;  %vm815_vm1 = vcmp.lt.s32.totalorder %v2286_v37, 1 }
 0x14e   : > { %v1696_v44 = vpop.eup %1695  ;;  %v779_v51 = vxor.u32 2147483648, %v1694_v45  ;;  %v805_v32 = vor.u32 %v804_v31, %v803_v60  ;;  %v1539_v58 = vmin.u32 %v952_v49, %v2290_v59  ;;  %v802_v26 = vor.u32 %v801_v4, %v800_v40 }
 0x14f   : > { %v776_v24 = vxor.u32 2147483648, %v1696_v44  ;;  %vm818_vm2 = vcmp.lt.s32.totalorder %v2286_v37, 4  ;;  %v661_v60 = vxor.u32 2147483648, %v660_v15  ;;  %vm816_vm3 = vcmp.lt.s32.totalorder %v2286_v37, 2 }
 0x150   : > { %v780_v3 = vsel %vm778_vm11, %v779_v51, %v1696_v44  ;;  %v1202_v5 = vsel %vm1200_vm15, %v779_v51, %v1696_v44  ;;  %v824_v14 = vsel %vm818_vm2, %v811_v62, 920167782  ;;  %v827_v20 = vsel %vm815_vm1, %v805_v32, %v808_v48 }
 0x151   : > { %v777_v41 = vsel %vm775_vm10, %v1694_v45, %v776_v24  ;;  %v1199_v23 = vsel %vm1197_vm14, %v1694_v45, %v776_v24  ;;  %v954_v45 = vclz %v1539_v58  ;;  %v828_v33 = vsel %vm818_vm2, %v814_v27, 1326507024  ;;  %v319_v27 = vpop.permute.xlu1 %318 }
 0x152   : > { %v781_v50 = vsel %vm774_vm12, %v777_v41, %v780_v3  ;;  %v1203_v31 = vsel %vm1196_vm13, %v1199_v23, %v1202_v5  ;;  %vm817_vm4 = vcmp.lt.s32.totalorder %v2286_v37, 3  ;;  %v2325_v44 = vshll.u32 %v791_v63, 8 }
 0x153   : > { %v2314_v55 = vsel %vm772_vm0, nan, %v781_v50  ;;  %v2318_v54 = vsel %vm772_vm0, nan, %v1203_v31  ;;  %v1540_v40 = vadd.s32 4294967294, %v954_v45  ;;  %v799_v52 = vshrl.u32 %v1782_v29, %v798_v61  ;;  %v314_v45 = vpop.permute.xlu0 %313 }
 0x154   : > { %v820_v51 = vsel %vm818_vm2, %v808_v48, 2102212464  ;;  %v829_v4 = vsel %vm817_vm4, %v811_v62, %v828_v33  ;;  %v542_v1 = vadd.f32 %v530_v39, %v2129_v30  ;;  %v823_v28 = vsel %vm815_vm1, %v802_v26, %v805_v32 }
 0x155   : > { %vm1541_vm6 = vcmp.lt.s32.totalorder %v1540_v40, 0  ;;  %v825_v24 = vsel %vm817_vm4, %v808_v48, %v824_v14  ;;  %v830_v49 = vsel %vm816_vm3, %v827_v20, %v829_v4  ;;  %v662_v63 = vsel %vm579_vm5, %v661_v60, %v660_v15 }
 0x156   : > { %v957_v29 = vsel %vm1541_vm6, 0, %v1540_v40  ;;  %v2340_v61 = vmul.u32.u64.low %v2325_v44, %v830_v49  ;;  %v2341_v3 = vmul.u32.u64.high %v2325_v44, %v830_v49, %v2340_v61  ;;  %v942_v30 = vadd.s32 %v2211_v57, %v2208_v35 }
 0x157   : > { %v958_v5 = vsub.s32 32, %v957_v29  ;;  %v819_v62 = vsel %vm815_vm1, %v799_v52, %v802_v26  ;;  %v821_v48 = vsel %vm817_vm4, %v805_v32, %v820_v51  ;;  %v2350_v41 = vadd.s32 3, %v2258_v19 }
 0x158   : > { %v962_v15 = vsub.s32 4294967266, %v957_v29  ;;  %v826_v23 = vsel %vm816_vm3, %v823_v28, %v825_v24  ;;  %v2356_v58 = vmul.f32 %v2277_v34, %v2277_v34  ;;  %v665_v35 = vsel %vm2244_vm9, %v1998_v53, %v662_v63  ;;  %v324_v63 = vpop.permute.xlu0 %323 }
 0x159   : > { %v959_v57 = vshll.u32 %v2290_v59, %v957_v29  ;;  %v960_v39 = vshrl.u32 %v942_v30, %v958_v5  ;;  %v512_v32 = vadd.f32 %v2021_v7, %v319_v27  ;;  %v822_v19 = vsel %vm816_vm3, %v819_v62, %v821_v48 }
 0x15a   : > { %v963_v50 = vadd.s32 127, %v962_v15  ;;  %v558_v31 = vmul.f32 10.0, %v2284_v22  ;;  %v546_v26 = vadd.f32 %v542_v1, %v2134_v47  ;;  %vm888_vm5 = vcmp.lt.s32.totalorder %v2019_v6, 0 }
 0x15b   : > { %v961_v34 = vor.u32 %v960_v39, %v959_v57  ;;  %v2369_v42 = vmul.u32.u64.low %v2325_v44, %v826_v23  ;;  %v2370_v60 = vmul.u32.u64.high %v2325_v44, %v826_v23, %v2369_v42  ;;  %v538_v59 = vmul.f32 %v512_v32, %v512_v32 }
 0x15c   : > { %1697 = vcosq.f32 %v665_v35  ;;  %v964_v7 = vshll.u32 %v963_v50, 23  ;;  %v467_v37 = vadd.f32 %v2023_v8, %v2091_v25  ;;  %v482_v22 = vadd.f32 %v2028_v16, %v2097_v38  ;;  %v329_v16 = vpop.permute.xlu1 %328 }
 0x15d   : > { %1699 = vsinq.f32 %v665_v35  ;;  %v972_v47 = vsub.s32 4, %v2269_v11  ;;  %v550_v14 = vadd.f32 %v546_v26, %v538_v59  ;;  %v507_v20 = vadd.f32 %v2025_v10, %v314_v45 }
 0x15e   : > { %v2538_v33 = vand.u32 2147483647, %v2019_v6  ;;  %v965_v52 = vor.u32 4788187, %v964_v7  ;;  %v838_v51 = vmul.u32 %v2325_v44, %v822_v19  ;;  %vm840_vm8 = vc.u32 %v2341_v3, %v2369_v42 }
 0x15f   : > { %v529_v8 = vmul.f32 %v467_v37, %v467_v37  ;;  %v968_v25 = vcvt.s32.f32 %v961_v34  ;;  %v841_v38 = vadd.s32 1, %v2370_v60  ;;  %v554_v4 = vmul.f32 -100.0, %v550_v14 }
 0x160   : > { %vm2381_vm7 = vcmp.le.f32.partialorder %v2538_v33, 0.7853982  ;;  %v532_v1 = vmul.f32 %v482_v22, %v482_v22  ;;  %v966_v10 = vand.u32 2147483647, %v965_v52  ;;  %v522_v24 = vadd.f32 %v2030_v17, %v329_v16 }
 0x161   : > { %v541_v28 = vadd.f32 %v529_v8, %v2138_v46  ;;  %v477_v49 = vadd.f32 %v2032_v18, %v2113_v2  ;;  %v842_v44 = vsel %vm840_vm8, %v841_v38, %v2370_v60  ;;  %v562_v29 = vsub.f32 %v554_v4, %v558_v31 }
 0x162   : > { %v537_v61 = vmul.f32 %v507_v20, %v507_v20  ;;  %v544_v30 = vadd.f32 %v532_v1, %v2250_v12  ;;  %v969_v5 = vmul.f32 %v968_v25, %v966_v10  ;;  %v843_v62 = vadd.s32 %v842_v44, %v838_v51 }
 0x163   : > { %v545_v48 = vadd.f32 %v541_v28, %v2240_v36  ;;  %v517_v27 = vadd.f32 %v2034_v21, %v324_v63  ;;  %v567_v15 = vmul.f32 1.442695, %v562_v29  ;;  %v540_v46 = vmul.f32 %v522_v24, %v522_v24 }
 0x164   : > { %v548_v17 = vadd.f32 %v544_v30, %v2260_v56  ;;  %v531_v23 = vmul.f32 %v477_v49, %v477_v49  ;;  %v970_v35 = vxor.u32 2147483648, %v969_v5  ;;  %v973_v18 = vsel %vm888_vm5, %v972_v47, %v2269_v11 }
 0x165   : > { %v844_v2 = vadd.s32 536870912, %v843_v62  ;;  %v549_v57 = vadd.f32 %v545_v48, %v537_v61  ;;  %1701 = vpow2.f32 %v567_v15  ;;  %v557_v12 = vmul.f32 10.0, %v467_v37 }
 0x166   : > { %v552_v39 = vadd.f32 %v548_v17, %v540_v46  ;;  %v543_v32 = vadd.f32 %v531_v23, %v2266_v0  ;;  %v1698_v36 = vpop.eup %1697  ;;  %v971_v21 = vsel %vm888_vm5, %v970_v35, %v969_v5  ;;  %v560_v19 = vmul.f32 10.0, %v482_v22 }
 0x167   : > { %v2404_v50 = vshrl.u32 %v844_v2, 30  ;;  %v553_v56 = vmul.f32 -100.0, %v549_v57  ;;  %v1700_v31 = vpop.eup %1699  ;;  %v974_v11 = vsel %vm2381_vm7, %v2019_v6, %v971_v21  ;;  %v539_v45 = vmul.f32 %v517_v27, %v517_v27 }
 0x168   : > { %v556_v26 = vmul.f32 -100.0, %v552_v39  ;;  %v547_v34 = vadd.f32 %v543_v32, %v2356_v58  ;;  %v975_v0 = vsel %vm2381_vm7, 0, %v973_v18  ;;  %1703 = vcosq.f32 %v974_v11 }
 0x169   : > { %v846_v60 = vshll.u32 %v2404_v50, 30  ;;  %v561_v59 = vsub.f32 %v553_v56, %v557_v12  ;;  %v1091_v7 = vand.u32 3, %v2350_v41  ;;  %1705 = vsinq.f32 %v974_v11 }
 0x16a   : > { %v564_v37 = vsub.f32 %v556_v26, %v560_v19  ;;  %v551_v22 = vadd.f32 %v547_v34, %v539_v45  ;;  %v673_v47 = vxor.u32 2147483648, %v1700_v31  ;;  %v676_v14 = vxor.u32 2147483648, %v1698_v36 }
 0x16b   : > { %v2414_v20 = vsub.s32 %v843_v62, %v846_v60  ;;  %v565_v33 = vmul.f32 1.442695, %v561_v59  ;;  %v1402_v52 = vadd.s32 3, %v975_v0  ;;  %v2416_v51 = vmul.f32 10.0, %v477_v49 }
 0x16c   : > { %v571_v58 = vmul.f32 1.442695, %v564_v37  ;;  %v2418_v40 = vmul.f32 -100.0, %v551_v22  ;;  %vm672_vm9 = vcmp.eq.s32.totalorder %v2273_v9, 0  ;;  %vm675_vm10 = vcmp.eq.s32.totalorder %v2273_v9, 2 }
 0x16d   : > { %v849_v41 = vsub.s32 0, %v2414_v20  ;;  %1707 = vpow2.f32 %v565_v33  ;;  %vm1093_vm11 = vcmp.eq.s32.totalorder %v1091_v7, 0  ;;  %vm1096_vm12 = vcmp.eq.s32.totalorder %v1091_v7, 2 }
 0x16e   : > { %v979_v8 = vand.u32 3, %v975_v0  ;;  %v563_v16 = vsub.f32 %v2418_v40, %v2416_v51  ;;  %v674_v25 = vsel %vm672_vm9, %v1698_v36, %v673_v47  ;;  %v677_v38 = vsel %vm675_vm10, %v676_v14, %v1700_v31 }
 0x16f   : > { %v1535_v4 = vmin.u32 %v849_v41, %v2414_v20  ;;  %1709 = vpow2.f32 %v571_v58  ;;  %v1702_v1 = vpop.eup %1701  ;;  %v1095_v10 = vsel %vm1093_vm11, %v1698_v36, %v673_v47  ;;  %v1098_v28 = vsel %vm1096_vm12, %v676_v14, %v1700_v31 }
 0x170   : > { %v1403_v24 = vand.u32 3, %v1402_v52  ;;  %vm671_vm13 = vcmp.lt.s32.totalorder %v2273_v9, 2  ;;  %v990_v63 = vmul.f32 %v1702_v1, %v2314_v55  ;;  %v1414_v44 = vmul.f32 %v1702_v1, %v2318_v54 }
 0x171   : > { %v851_v49 = vclz %v1535_v4  ;;  %vm669_vm14 = vweird.f32 %v1998_v53  ;;  %v678_v29 = vsel %vm671_vm13, %v674_v25, %v677_v38  ;;  %vm1092_vm15 = vcmp.lt.s32.totalorder %v1091_v7, 2 }
 0x172   : > { %vm978_vm0 = vweird.f32 %v2019_v6  ;;  %v1704_v61 = vpop.eup %1703  ;;  %v1099_v30 = vsel %vm1092_vm15, %v1095_v10, %v1098_v28  ;;  %vm980_vm1 = vcmp.lt.s32.totalorder %v979_v8, 2  ;;  %vm981_vm2 = vcmp.eq.s32.totalorder %v979_v8, 0  ;;  %994 = vst [vmem:[%s2432_s30 + $0x8] sm:$0xff] %v990_v63  ;;  %1418 = vst [vmem:[%s2432_s30 + $0x28] sm:$0xff] %v1414_v44 }
 0x173   : > { %v1536_v5 = vadd.s32 4294967294, %v851_v49  ;;  %v1706_v9 = vpop.eup %1705  ;;  %vm984_vm3 = vcmp.eq.s32.totalorder %v979_v8, 2  ;;  %v985_v55 = vxor.u32 2147483648, %v1704_v61  ;;  %vm1404_vm4 = vcmp.lt.s32.totalorder %v1403_v24, 2 }
 0x174   : > { %vm1405_vm6 = vcmp.eq.s32.totalorder %v1403_v24, 0  ;;  %v679_v54 = vsel %vm669_vm14, nan, %v678_v29  ;;  %v982_v62 = vxor.u32 2147483648, %v1706_v9  ;;  %vm1408_vm5 = vcmp.eq.s32.totalorder %v1403_v24, 2 }
 0x175   : > { %vm1537_vm7 = vcmp.lt.s32.totalorder %v1536_v5, 0  ;;  %v1100_v48 = vsel %vm669_vm14, nan, %v1099_v30  ;;  %v986_v27 = vsel %vm984_vm3, %v985_v55, %v1706_v9  ;;  %v1410_v15 = vsel %vm1408_vm5, %v985_v55, %v1706_v9 }
 0x176   : > { %v854_v46 = vsel %vm1537_vm7, 0, %v1536_v5  ;;  %v983_v23 = vsel %vm981_vm2, %v1704_v61, %v982_v62  ;;  %v1407_v35 = vsel %vm1405_vm6, %v1704_v61, %v982_v62  ;;  %v839_v18 = vadd.s32 %v2369_v42, %v2341_v3 }
 0x177   : > { %v1708_v17 = vpop.eup %1707  ;;  %v855_v2 = vsub.s32 32, %v854_v46  ;;  %v987_v57 = vsel %vm980_vm1, %v983_v23, %v986_v27  ;;  %v1411_v12 = vsel %vm1404_vm4, %v1407_v35, %v1410_v15  ;;  %v859_v53 = vsub.s32 4294967266, %v854_v46 }
 0x178   : > { %v989_v39 = vmul.f32 %v1708_v17, %v679_v54  ;;  %v988_v36 = vsel %vm978_vm0, nan, %v987_v57  ;;  %v1412_v21 = vsel %vm978_vm0, nan, %v1411_v12  ;;  %v1413_v19 = vmul.f32 %v1708_v17, %v1100_v48 }
 0x179   : > { %v1710_v32 = vpop.eup %1709  ;;  %v857_v56 = vshrl.u32 %v839_v18, %v855_v2  ;;  %v856_v3 = vshll.u32 %v2414_v20, %v854_v46  ;;  %v860_v42 = vadd.s32 127, %v859_v53  ;;  %v869_v6 = vsub.s32 4, %v2404_v50 }
 0x17a   : > { %993 = vst [vmem:[%s2432_s30] sm:$0xff] %v989_v39  ;;  %v992_v31 = vmul.f32 %v1710_v32, %v988_v36  ;;  %v1416_v11 = vmul.f32 %v1710_v32, %v1412_v21  ;;  %1417 = vst [vmem:[%s2432_s30 + $0x20] sm:$0xff] %v1413_v19  ;;  %vm785_vm8 = vcmp.lt.s32.totalorder %v2156_v43, 0  ;;  %vm784_vm9 = vcmp.le.f32.partialorder %v783_v13, 0.7853982 }
 0x17b   : > { %v858_v26 = vor.u32 %v857_v56, %v856_v3  ;;  %v861_v45 = vshll.u32 %v860_v42, 23  ;;  %v870_v22 = vsel %vm785_vm8, %v869_v6, %v2404_v50  ;;  %v569_v20 = vmul.f32 1.442695, %v563_v16 }
 0x17c   : > { %996 = vst [vmem:[%s2432_s30 + $0x18] sm:$0xff] %v992_v31  ;;  %1420 = vst [vmem:[%s2432_s30 + $0x38] sm:$0xff] %v1416_v11  ;;  %v872_v14 = vsel %vm784_vm9, 0, %v870_v22  ;;  %vm875_vm0 = vweird.f32 %v2156_v43 }
 0x17d   : > { %v862_v34 = vor.u32 4788187, %v861_v45  ;;  %v865_v60 = vcvt.s32.f32 %v858_v26  ;;  %v1298_v33 = vadd.s32 3, %v872_v14  ;;  %v876_v52 = vand.u32 3, %v872_v14 }
 0x17f   : > { %v863_v0 = vand.u32 2147483647, %v862_v34  ;;  %v1299_v58 = vand.u32 3, %v1298_v33  ;;  %vm881_vm10 = vcmp.eq.s32.totalorder %v876_v52, 2  ;;  %vm878_vm12 = vcmp.eq.s32.totalorder %v876_v52, 0 }
 0x180   : > { %vm877_vm14 = vcmp.lt.s32.totalorder %v876_v52, 2 }
 0x181   : > { %v866_v59 = vmul.f32 %v865_v60, %v863_v0  ;;  %vm1304_vm11 = vcmp.eq.s32.totalorder %v1299_v58, 2  ;;  %vm1301_vm13 = vcmp.eq.s32.totalorder %v1299_v58, 0  ;;  %vm1300_vm15 = vcmp.lt.s32.totalorder %v1299_v58, 2 }
 0x183   : > { %v867_v7 = vxor.u32 2147483648, %v866_v59 }
 0x185   : > { %v868_v37 = vsel %vm785_vm8, %v867_v7, %v866_v59 }
 0x186   : > { %v871_v47 = vsel %vm784_vm9, %v2156_v43, %v868_v37 }
 0x187   : > { %1711 = vcosq.f32 %v871_v47 }
 0x188   : > { %1713 = vsinq.f32 %v871_v47 }
 0x189   : > { %1715 = vpow2.f32 %v569_v20 }
 0x191   : > { %v1712_v41 = vpop.eup %1711 }
 0x192   : > { %v1714_v8 = vpop.eup %1713  ;;  %v882_v13 = vxor.u32 2147483648, %v1712_v41 }
 0x193   : > { %v879_v25 = vxor.u32 2147483648, %v1714_v8  ;;  %v1716_v1 = vpop.eup %1715 }
 0x194   : > { %v883_v50 = vsel %vm881_vm10, %v882_v13, %v1714_v8  ;;  %v1306_v38 = vsel %vm1304_vm11, %v882_v13, %v1714_v8 }
 0x195   : > { %v880_v51 = vsel %vm878_vm12, %v1712_v41, %v879_v25  ;;  %v1303_v40 = vsel %vm1301_vm13, %v1712_v41, %v879_v25 }
 0x196   : > { %v884_v16 = vsel %vm877_vm14, %v880_v51, %v883_v50  ;;  %v1307_v4 = vsel %vm1300_vm15, %v1303_v40, %v1306_v38 }
 0x197   : > { %v885_v10 = vsel %vm875_vm0, nan, %v884_v16  ;;  %v1308_v28 = vsel %vm875_vm0, nan, %v1307_v4 }
 0x198   : > { %v991_v24 = vmul.f32 %v1716_v1, %v885_v10  ;;  %v1415_v49 = vmul.f32 %v1716_v1, %v1308_v28 }
 0x19a   : > { %995 = vst [vmem:[%s2432_s30 + $0x10] sm:$0xff] %v991_v24  ;;  %1419 = vst [vmem:[%s2432_s30 + $0x30] sm:$0xff] %v1415_v49 }
 0x19b   : > { %1730 = shalt.err (!%p1727_p5)
}
 0x19c   : > { %s1731_s20 = scalar_lea.hbm %s2472_s8, 1024  ;;  %s1735_s26 = scalar_lea.hbm %s2521_s3, 2048 }
 0x19d   : > { %p1732_p7 = scmp.ne.s32.totalorder %s2472_s8, %s1731_s20  ;;  %p1736_p12 = scmp.lt.u32.totalorder %s2472_s8, %s2521_s3 }
 0x19e   : > { %p1737_p13 = scmp.lt.u32.totalorder %s1735_s26, %s1731_s20  ;;  %p1739_p1 = scmp.lt.u32.totalorder %s1731_s20, %s2472_s8 }
 0x19f   : > { %p1733_p10 = pnand %p1732_p7, %p1850_p6 }
 0x1a0   : > { %p1738_p0 = por %p1737_p13, %p1736_p12 }
 0x1a1   : > { %p1734_p11 = pneg %p1733_p10 }
 0x1a2   : > { %p1740_p2 = por %p1739_p1, %p1738_p0 }
 0x1a4   : > { %p1741_p3 = pnand %p1740_p2, %p1734_p11 }
 0x1a6   : > { %1744 = shalt.err (!%p1741_p3)
}
 0x1a7   : > { %s1789_s29 = smov 128   ;;  %s1790_s30 = smov 256  }
 0x1a8   : > { %s1791_s6 = smov 8  }
 0x1a9   : > { %1642 = dma.vmem_to_hbm [thread:$0]  (%p1850_p6), %s2466_s5, 1024, %s2472_s8, %s1422_s9, %s1789_s29, %s1790_s30, %s1791_s6  }
 0x1aa PF: > { %s1449_s16 = sand.u32 1, %s1767_s12   ;;  %p1645_p4 = pnand %p1504_p9, %p1854_p8 }
 0x1ab   : > { %s1450_s7 = scalar_lea.sflag [#allocation4], %s1449_s16 }
 0x1ac   : > { %1762 = dma.done.wait (!%p1645_p4), %s1450_s7, 1024  }
 0x1ad   : > { %1764 = vsyncadd (!%p1645_p4), %s1450_s7, 4294966272  ;;  %p13_p5 = scmp.ge.s32.totalorder %s1835_s18, 4   ;;  %s2541_s12 = smov %s1771_s13 }
 0x1ae   : > { %s2542_s13 = smov %s1775_s14  ;;  %s2543_s14 = smov %s1848_s21 }
 0x1af   : > { %s2544_s15 = smov %s1835_s18  ;;  %15 = sbr.rel (!%p13_p5) target bundleno = 3 (0x3), region = 110 }
 0x1b6   :  { %1455 = vsyncpa [#allocation4], 1 }
 0x1b7   :  { %1457 = vsyncpa [#allocation4 + $0x1], 1 }

</bundles_post_ra>
